<compile_context>
chip_gen: v7x
topology: tpu7x:2x2x1
jax: 0.10.0
libtpu: 0.0.40
codegen_flags: <defaults>
</compile_context>

<pallas_src>
import math

import jax
import jax.numpy as jnp
from jax.experimental import pallas as pl
from jax.experimental.pallas import tpu as pltpu


# ---------------------------------------------------------------------------
# Kernel
# ---------------------------------------------------------------------------
def _actor_kernel(x_ref, lstm_ref, mlp_ref, out_ref):
    """Whole ACTOR forward in one grid step (everything resident in VMEM).

    x_ref    : (L, B, nin)            fused per-layer inputs, nin = n_crncy*in_sz
    lstm_ref : (L, nin + nH + 1, 4nH) rows [0:nin]=W_ih_bd, [nin:nin+nH]=W_hh_bd,
                                      last row = (b_ih + b_hh) block-packed
    mlp_ref  : (R, 384 + A)           cols [0:256]=[w1;b1], [256:384]=[w2;b2],
                                      [384:384+A]=[w3;b3]
    out_ref  : (B, A)
    """
    L, B, nin = x_ref.shape
    g4 = lstm_ref.shape[2]
    nH = g4 // 4                      # n_crncy * h_sz  (== MLP input width)
    A = out_ref.shape[1]

    # ---- hoisted input projections: no dependence on h, off the critical path
    pre = []
    for l in range(L):                # static unroll (L is small)
        w_ih = lstm_ref[l, 0:nin, :]
        bias = lstm_ref[l, nin + nH:nin + nH + 1, :]
        pre.append(jnp.dot(x_ref[l], w_ih,
                           preferred_element_type=jnp.float32) + bias)

    # ---- serial recurrent chain, all currencies fused block-diagonally ------
    h = jnp.zeros((B, nH), jnp.float32)
    c = jnp.zeros((B, nH), jnp.float32)
    for l in range(L):                # static unroll; only h @ W_hh on the path
        w_hh = lstm_ref[l, nin:nin + nH, :]
        gates = pre[l] + jnp.dot(h, w_hh, preferred_element_type=jnp.float32)
        sg = jax.nn.sigmoid(gates)    # ONE EUP pass covers i, f, o slabs
        tg = jnp.tanh(gates)          # ONE EUP pass covers the g slab
        # PyTorch LSTMCell gate order [i, f, g, o]; slabs are n_crncy*H wide.
        i_g = sg[:, 0 * nH:1 * nH]
        f_g = sg[:, 1 * nH:2 * nH]
        g_g = tg[:, 2 * nH:3 * nH]
        o_g = sg[:, 3 * nH:4 * nH]
        c = f_g * c + i_g * g_g
        h = o_g * jnp.tanh(c)

    # h is already the hstacked per-currency encoding (B, n_crncy*H).
    w1 = mlp_ref[0:nH, 0:256];            b1 = mlp_ref[nH:nH + 1, 0:256]
    w2 = mlp_ref[0:256, 256:384];         b2 = mlp_ref[256:257, 256:384]
    w3 = mlp_ref[0:128, 384:384 + A];     b3 = mlp_ref[128:129, 384:384 + A]

    # MLP + final Tanh (LeakyReLU default negative_slope = 0.01)
    h1 = jnp.dot(h, w1, preferred_element_type=jnp.float32) + b1
    h1 = jnp.where(h1 >= 0, h1, 0.01 * h1)
    h2 = jnp.dot(h1, w2, preferred_element_type=jnp.float32) + b2
    h2 = jnp.where(h2 >= 0, h2, 0.01 * h2)
    logits = jnp.dot(h2, w3, preferred_element_type=jnp.float32) + b3
    out_ref[...] = jnp.tanh(logits).astype(out_ref.dtype)


# ---------------------------------------------------------------------------
# Parameter init (PyTorch layouts) and host-side packing for the kernel
# ---------------------------------------------------------------------------
def init_actor_params(key, n_crncy, in_sz, h_sz, n_lstm_lyrs, action_space):
    """Synthetic params in native PyTorch layouts (nn.LSTMCell / nn.Linear)."""
    L, H = n_lstm_lyrs, h_sz
    ks = jax.random.split(key, 10)

    kl = 1.0 / math.sqrt(H)           # nn.LSTMCell init range
    w_ih = jax.random.uniform(ks[0], (n_crncy, L, 4 * H, in_sz), jnp.float32, -kl, kl)
    w_hh = jax.random.uniform(ks[1], (n_crncy, L, 4 * H, H), jnp.float32, -kl, kl)
    b_ih = jax.random.uniform(ks[2], (n_crncy, L, 4 * H), jnp.float32, -kl, kl)
    b_hh = jax.random.uniform(ks[3], (n_crncy, L, 4 * H), jnp.float32, -kl, kl)

    def linear(kw, kb, fan_in, fan_out):   # nn.Linear init range, torch (out,in)
        bound = 1.0 / math.sqrt(fan_in)
        w = jax.random.uniform(kw, (fan_out, fan_in), jnp.float32, -bound, bound)
        b = jax.random.uniform(kb, (fan_out,), jnp.float32, -bound, bound)
        return w, b

    mlp_in = n_crncy * H
    w1, b1 = linear(ks[4], ks[5], mlp_in, 256)
    w2, b2 = linear(ks[6], ks[7], 256, 128)
    w3, b3 = linear(ks[8], ks[9], 128, action_space)
    return {"w_ih": w_ih, "w_hh": w_hh, "b_ih": b_ih, "b_hh": b_hh,
            "w1": w1, "b1": b1, "w2": w2, "b2": b2, "w3": w3, "b3": b3}


def pack_actor_params(p):
    """Pack torch-layout params into the kernel's 2 weight slabs:
       * block-diagonal W_ih / W_hh with [i|f|g|o] column slabs of width n_crncy*H,
       * biases pre-added and appended as the slab's last row,
       * single MLP slab with [w;b] column blocks at 128-lane-aligned offsets."""
    w_ih, w_hh, b_ih, b_hh = p["w_ih"], p["w_hh"], p["b_ih"], p["b_hh"]
    n_crncy, L, H4, in_sz = w_ih.shape
    H = H4 // 4
    nin, nH = n_crncy * in_sz, n_crncy * H
    g4 = 4 * nH

    wih_bd = jnp.zeros((L, n_crncy, in_sz, 4, n_crncy, H), jnp.float32)
    whh_bd = jnp.zeros((L, n_crncy, H, 4, n_crncy, H), jnp.float32)
    b_bd = jnp.zeros((L, 4, n_crncy, H), jnp.float32)
    for e in range(n_crncy):
        wih_e = jnp.transpose(w_ih[e].reshape(L, 4, H, in_sz), (0, 3, 1, 2))
        whh_e = jnp.transpose(w_hh[e].reshape(L, 4, H, H), (0, 3, 1, 2))
        wih_bd = wih_bd.at[:, e, :, :, e, :].set(wih_e)
        whh_bd = whh_bd.at[:, e, :, :, e, :].set(whh_e)
        b_bd = b_bd.at[:, :, e, :].set((b_ih[e] + b_hh[e]).reshape(L, 4, H))

    lstm_slab = jnp.concatenate([wih_bd.reshape(L, nin, g4),
                                 whh_bd.reshape(L, nH, g4),
                                 b_bd.reshape(L, 1, g4)], axis=1)

    w1, b1, w2, b2, w3, b3 = p["w1"], p["b1"], p["w2"], p["b2"], p["w3"], p["b3"]
    A = w3.shape[0]
    R = max(nH, 256, 128) + 1
    mlp_slab = jnp.zeros((R, 384 + A), jnp.float32)
    mlp_slab = mlp_slab.at[:nH, 0:256].set(w1.T)
    mlp_slab = mlp_slab.at[nH, 0:256].set(b1)
    mlp_slab = mlp_slab.at[:256, 256:384].set(w2.T)
    mlp_slab = mlp_slab.at[256, 256:384].set(b2)
    mlp_slab = mlp_slab.at[:128, 384:384 + A].set(w3.T)
    mlp_slab = mlp_slab.at[128, 384:384 + A].set(b3)

    return {"lstm_slab": lstm_slab, "mlp_slab": mlp_slab,
            "n_crncy": n_crncy, "in_sz": in_sz, "h_sz": H,
            "n_layers": L, "action_space": A}


# ---------------------------------------------------------------------------
# Forward wrapper (mirrors ACTOR.forward)
# ---------------------------------------------------------------------------
def actor_forward(packed, S_t):
    """S_t: stacked per-currency windows (n_crncy, B, in_size, n_cells), or
    (n_crncy, in_size, n_cells) for the non-batch case (promoted to B=1, which
    matches the `non_batch` reshape(1, r*c) since each encoding is (1, H)).
    Returns tanh(MLP(hstack(encodings))) of shape (B, action_space)."""
    if S_t.ndim == 3:
        S_t = S_t[:, None, :, :]
    n_crncy, B, in_sz, n_cells = S_t.shape
    L = packed["n_layers"]
    assert n_crncy == packed["n_crncy"] and in_sz == packed["in_sz"]
    assert n_cells >= L, "need at least n_lstm_lyrs slices along last axis"
    A = packed["action_space"]
    nin = n_crncy * in_sz

    # Raw per-window reshape (same element order as torch .reshape); keep the
    # first L slices each LSTMCell layer consumes, then fuse currencies along
    # the feature axis to match the block-diagonal weight layout.
    # TODO(synk): validate the raw-reshape element order once against a real
    #   torch trace of the RL_utils encoder (self-test uses the same reshape).
    x = S_t.reshape(n_crncy, n_cells, B, in_sz)[:, :L]          # (n_crncy, L, B, in)
    x = jnp.transpose(x, (1, 2, 0, 3)).reshape(L, B, nin)        # (L, B, nin)

    vmem = pl.BlockSpec(memory_space=pltpu.MemorySpace.VMEM)
    return pl.pallas_call(
        _actor_kernel,
        out_shape=jax.ShapeDtypeStruct((B, A), jnp.float32),
        in_specs=[vmem, vmem, vmem],          # 3 whole-array VMEM blocks, no grid
        out_specs=vmem,
        compiler_params=pltpu.CompilerParams(
            vmem_limit_bytes=32 * 1024 * 1024),   # explicit; v7x scoped default
    )(x, packed["lstm_slab"], packed["mlp_slab"])


# ---------------------------------------------------------------------------
# Pure-JAX reference (per-currency, unfused torch-layout math) for verification
# ---------------------------------------------------------------------------
def actor_reference(params, S_t):
    if S_t.ndim == 3:
        S_t = S_t[:, None, :, :]
    n_crncy, B, in_sz, n_cells = S_t.shape
    w_ih, w_hh, b_ih, b_hh = params["w_ih"], params["w_hh"], params["b_ih"], params["b_hh"]
    _, L, H4, _ = w_ih.shape
    H = H4 // 4
    x = S_t.reshape(n_crncy, n_cells, B, in_sz)

    encs = []
    for e in range(n_crncy):
        h = jnp.zeros((B, H), jnp.float32)
        c = jnp.zeros((B, H), jnp.float32)
        for l in range(L):
            gates = (x[e, l] @ w_ih[e, l].T + b_ih[e, l]
                     + h @ w_hh[e, l].T + b_hh[e, l])
            i_g = jax.nn.sigmoid(gates[:, 0 * H:1 * H])
            f_g = jax.nn.sigmoid(gates[:, 1 * H:2 * H])
            g_g = jnp.tanh(gates[:, 2 * H:3 * H])
            o_g = jax.nn.sigmoid(gates[:, 3 * H:4 * H])
            c = f_g * c + i_g * g_g
            h = o_g * jnp.tanh(c)
        encs.append(h)

    mlp_in = jnp.concatenate(encs, axis=-1)
    h1 = mlp_in @ params["w1"].T + params["b1"]
    h1 = jnp.where(h1 >= 0, h1, 0.01 * h1)
    h2 = h1 @ params["w2"].T + params["b2"]
    h2 = jnp.where(h2 >= 0, h2, 0.01 * h2)
    return jnp.tanh(h2 @ params["w3"].T + params["b3"])


if __name__ == "__main__":
    n_crncy, in_sz, h_sz, n_lstm_lyrs, batch, action_space = 2, 16, 32, 4, 2, 8

    key = jax.random.PRNGKey(0)
    k_params, k_x = jax.random.split(key)
    params = init_actor_params(k_params, n_crncy, in_sz, h_sz, n_lstm_lyrs,
                               action_space)
    packed = pack_actor_params(params)

    # Stacked per-currency windows in PyTorch layout: (n_crncy, B, in_size, n_cells)
    S_t = jax.random.normal(k_x, (n_crncy, batch, in_sz, n_lstm_lyrs), jnp.float32)

    out = jax.block_until_ready(actor_forward(packed, S_t))
    ref = actor_reference(params, S_t)

    assert out.shape == (batch, action_space)
    assert jnp.allclose(out, ref, atol=1e-4, rtol=1e-4), \
        "Pallas ACTOR kernel mismatch vs reference"

    print("KERNEL_OK")
</pallas_src>

<mosaic_0001>
module attributes {stable_mosaic.version = 11 : i64} {
  func.func @_actor_kernel(%arg0: memref<4x2x32xf32, #tpu.memory_space<vmem>>, %arg1: memref<4x97x256xf32, #tpu.memory_space<vmem>>, %arg2: memref<257x392xf32, #tpu.memory_space<vmem>>, %arg3: memref<2x8xf32, #tpu.memory_space<vmem>>) attributes {dimension_semantics = [], scalar_prefetch = 0 : i64, scratch_operands = 0 : i64, tpu.core_type = #tpu.core_type<tc>} {
    %c0 = arith.constant 0 : index
    %c0_0 = arith.constant 0 : index
    %c0_1 = arith.constant 0 : index
    %0 = vector.load %arg1[%c0, %c0_0, %c0_1] : memref<4x97x256xf32, #tpu.memory_space<vmem>>, vector<1x32x256xf32>
    %1 = vector.shape_cast %0 : vector<1x32x256xf32> to vector<32x256xf32>
    %c0_2 = arith.constant 0 : index
    %c96 = arith.constant 96 : index
    %c0_3 = arith.constant 0 : index
    %2 = vector.load %arg1[%c0_2, %c96, %c0_3] : memref<4x97x256xf32, #tpu.memory_space<vmem>>, vector<1x1x256xf32>
    %3 = vector.shape_cast %2 : vector<1x1x256xf32> to vector<1x256xf32>
    %c0_4 = arith.constant 0 : index
    %c0_5 = arith.constant 0 : index
    %c0_6 = arith.constant 0 : index
    %4 = vector.load %arg0[%c0_4, %c0_5, %c0_6] : memref<4x2x32xf32, #tpu.memory_space<vmem>>, vector<1x2x32xf32>
    %5 = vector.shape_cast %4 : vector<1x2x32xf32> to vector<2x32xf32>
    %cst = arith.constant dense<0.000000e+00> : vector<2x256xf32>
    %6 = tpu.matmul %5, %1, %cst {dimension_numbers = #tpu.dot_dimension_numbers<[1], [0], [0], [1], [0, 0, 1, 1], [], []>} : vector<2x32xf32>, vector<32x256xf32>, vector<2x256xf32> -> vector<2x256xf32>
    %7 = vector.broadcast %3 : vector<1x256xf32> to vector<2x256xf32>
    %8 = arith.addf %6, %7 : vector<2x256xf32>
    %c1 = arith.constant 1 : index
    %c0_7 = arith.constant 0 : index
    %c0_8 = arith.constant 0 : index
    %9 = vector.load %arg1[%c1, %c0_7, %c0_8] : memref<4x97x256xf32, #tpu.memory_space<vmem>>, vector<1x32x256xf32>
    %10 = vector.shape_cast %9 : vector<1x32x256xf32> to vector<32x256xf32>
    %c1_9 = arith.constant 1 : index
    %c96_10 = arith.constant 96 : index
    %c0_11 = arith.constant 0 : index
    %11 = vector.load %arg1[%c1_9, %c96_10, %c0_11] : memref<4x97x256xf32, #tpu.memory_space<vmem>>, vector<1x1x256xf32>
    %12 = vector.shape_cast %11 : vector<1x1x256xf32> to vector<1x256xf32>
    %c1_12 = arith.constant 1 : index
    %c0_13 = arith.constant 0 : index
    %c0_14 = arith.constant 0 : index
    %13 = vector.load %arg0[%c1_12, %c0_13, %c0_14] : memref<4x2x32xf32, #tpu.memory_space<vmem>>, vector<1x2x32xf32>
    %14 = vector.shape_cast %13 : vector<1x2x32xf32> to vector<2x32xf32>
    %cst_15 = arith.constant dense<0.000000e+00> : vector<2x256xf32>
    %15 = tpu.matmul %14, %10, %cst_15 {dimension_numbers = #tpu.dot_dimension_numbers<[1], [0], [0], [1], [0, 0, 1, 1], [], []>} : vector<2x32xf32>, vector<32x256xf32>, vector<2x256xf32> -> vector<2x256xf32>
    %16 = vector.broadcast %12 : vector<1x256xf32> to vector<2x256xf32>
    %17 = arith.addf %15, %16 : vector<2x256xf32>
    %c2 = arith.constant 2 : index
    %c0_16 = arith.constant 0 : index
    %c0_17 = arith.constant 0 : index
    %18 = vector.load %arg1[%c2, %c0_16, %c0_17] : memref<4x97x256xf32, #tpu.memory_space<vmem>>, vector<1x32x256xf32>
    %19 = vector.shape_cast %18 : vector<1x32x256xf32> to vector<32x256xf32>
    %c2_18 = arith.constant 2 : index
    %c96_19 = arith.constant 96 : index
    %c0_20 = arith.constant 0 : index
    %20 = vector.load %arg1[%c2_18, %c96_19, %c0_20] : memref<4x97x256xf32, #tpu.memory_space<vmem>>, vector<1x1x256xf32>
    %21 = vector.shape_cast %20 : vector<1x1x256xf32> to vector<1x256xf32>
    %c2_21 = arith.constant 2 : index
    %c0_22 = arith.constant 0 : index
    %c0_23 = arith.constant 0 : index
    %22 = vector.load %arg0[%c2_21, %c0_22, %c0_23] : memref<4x2x32xf32, #tpu.memory_space<vmem>>, vector<1x2x32xf32>
    %23 = vector.shape_cast %22 : vector<1x2x32xf32> to vector<2x32xf32>
    %cst_24 = arith.constant dense<0.000000e+00> : vector<2x256xf32>
    %24 = tpu.matmul %23, %19, %cst_24 {dimension_numbers = #tpu.dot_dimension_numbers<[1], [0], [0], [1], [0, 0, 1, 1], [], []>} : vector<2x32xf32>, vector<32x256xf32>, vector<2x256xf32> -> vector<2x256xf32>
    %25 = vector.broadcast %21 : vector<1x256xf32> to vector<2x256xf32>
    %26 = arith.addf %24, %25 : vector<2x256xf32>
    %c3 = arith.constant 3 : index
    %c0_25 = arith.constant 0 : index
    %c0_26 = arith.constant 0 : index
    %27 = vector.load %arg1[%c3, %c0_25, %c0_26] : memref<4x97x256xf32, #tpu.memory_space<vmem>>, vector<1x32x256xf32>
    %28 = vector.shape_cast %27 : vector<1x32x256xf32> to vector<32x256xf32>
    %c3_27 = arith.constant 3 : index
    %c96_28 = arith.constant 96 : index
    %c0_29 = arith.constant 0 : index
    %29 = vector.load %arg1[%c3_27, %c96_28, %c0_29] : memref<4x97x256xf32, #tpu.memory_space<vmem>>, vector<1x1x256xf32>
    %30 = vector.shape_cast %29 : vector<1x1x256xf32> to vector<1x256xf32>
    %c3_30 = arith.constant 3 : index
    %c0_31 = arith.constant 0 : index
    %c0_32 = arith.constant 0 : index
    %31 = vector.load %arg0[%c3_30, %c0_31, %c0_32] : memref<4x2x32xf32, #tpu.memory_space<vmem>>, vector<1x2x32xf32>
    %32 = vector.shape_cast %31 : vector<1x2x32xf32> to vector<2x32xf32>
    %cst_33 = arith.constant dense<0.000000e+00> : vector<2x256xf32>
    %33 = tpu.matmul %32, %28, %cst_33 {dimension_numbers = #tpu.dot_dimension_numbers<[1], [0], [0], [1], [0, 0, 1, 1], [], []>} : vector<2x32xf32>, vector<32x256xf32>, vector<2x256xf32> -> vector<2x256xf32>
    %34 = vector.broadcast %30 : vector<1x256xf32> to vector<2x256xf32>
    %35 = arith.addf %33, %34 : vector<2x256xf32>
    %cst_34 = arith.constant 0.000000e+00 : f32
    %36 = vector.broadcast %cst_34 : f32 to vector<2x64xf32>
    %cst_35 = arith.constant 0.000000e+00 : f32
    %37 = vector.broadcast %cst_35 : f32 to vector<2x64xf32>
    %c0_36 = arith.constant 0 : index
    %c32 = arith.constant 32 : index
    %c0_37 = arith.constant 0 : index
    %38 = vector.load %arg1[%c0_36, %c32, %c0_37] : memref<4x97x256xf32, #tpu.memory_space<vmem>>, vector<1x64x256xf32>
    %39 = vector.shape_cast %38 : vector<1x64x256xf32> to vector<64x256xf32>
    %cst_38 = arith.constant dense<0.000000e+00> : vector<2x256xf32>
    %40 = tpu.matmul %36, %39, %cst_38 {dimension_numbers = #tpu.dot_dimension_numbers<[1], [0], [0], [1], [0, 0, 1, 1], [], []>} : vector<2x64xf32>, vector<64x256xf32>, vector<2x256xf32> -> vector<2x256xf32>
    %41 = arith.addf %8, %40 : vector<2x256xf32>
    %42 = arith.negf %41 : vector<2x256xf32>
    %43 = math.exp %42 : vector<2x256xf32>
    %cst_39 = arith.constant 1.000000e+00 : f32
    %44 = vector.broadcast %cst_39 : f32 to vector<2x256xf32>
    %45 = arith.addf %44, %43 : vector<2x256xf32>
    %46 = arith.divf %44, %45 : vector<2x256xf32>
    %47 = math.tanh %41 : vector<2x256xf32>
    %48 = vector.extract_strided_slice %46 {offsets = [0, 0], sizes = [2, 64], strides = [1, 1]} : vector<2x256xf32> to vector<2x64xf32>
    %49 = vector.extract_strided_slice %46 {offsets = [0, 64], sizes = [2, 64], strides = [1, 1]} : vector<2x256xf32> to vector<2x64xf32>
    %50 = vector.extract_strided_slice %47 {offsets = [0, 128], sizes = [2, 64], strides = [1, 1]} : vector<2x256xf32> to vector<2x64xf32>
    %51 = vector.extract_strided_slice %46 {offsets = [0, 192], sizes = [2, 64], strides = [1, 1]} : vector<2x256xf32> to vector<2x64xf32>
    %52 = arith.mulf %49, %37 : vector<2x64xf32>
    %53 = arith.mulf %48, %50 : vector<2x64xf32>
    %54 = arith.addf %52, %53 : vector<2x64xf32>
    %55 = math.tanh %54 : vector<2x64xf32>
    %56 = arith.mulf %51, %55 : vector<2x64xf32>
    %c1_40 = arith.constant 1 : index
    %c32_41 = arith.constant 32 : index
    %c0_42 = arith.constant 0 : index
    %57 = vector.load %arg1[%c1_40, %c32_41, %c0_42] : memref<4x97x256xf32, #tpu.memory_space<vmem>>, vector<1x64x256xf32>
    %58 = vector.shape_cast %57 : vector<1x64x256xf32> to vector<64x256xf32>
    %cst_43 = arith.constant dense<0.000000e+00> : vector<2x256xf32>
    %59 = tpu.matmul %56, %58, %cst_43 {dimension_numbers = #tpu.dot_dimension_numbers<[1], [0], [0], [1], [0, 0, 1, 1], [], []>} : vector<2x64xf32>, vector<64x256xf32>, vector<2x256xf32> -> vector<2x256xf32>
    %60 = arith.addf %17, %59 : vector<2x256xf32>
    %61 = arith.negf %60 : vector<2x256xf32>
    %62 = math.exp %61 : vector<2x256xf32>
    %cst_44 = arith.constant 1.000000e+00 : f32
    %63 = vector.broadcast %cst_44 : f32 to vector<2x256xf32>
    %64 = arith.addf %63, %62 : vector<2x256xf32>
    %65 = arith.divf %63, %64 : vector<2x256xf32>
    %66 = math.tanh %60 : vector<2x256xf32>
    %67 = vector.extract_strided_slice %65 {offsets = [0, 0], sizes = [2, 64], strides = [1, 1]} : vector<2x256xf32> to vector<2x64xf32>
    %68 = vector.extract_strided_slice %65 {offsets = [0, 64], sizes = [2, 64], strides = [1, 1]} : vector<2x256xf32> to vector<2x64xf32>
    %69 = vector.extract_strided_slice %66 {offsets = [0, 128], sizes = [2, 64], strides = [1, 1]} : vector<2x256xf32> to vector<2x64xf32>
    %70 = vector.extract_strided_slice %65 {offsets = [0, 192], sizes = [2, 64], strides = [1, 1]} : vector<2x256xf32> to vector<2x64xf32>
    %71 = arith.mulf %68, %54 : vector<2x64xf32>
    %72 = arith.mulf %67, %69 : vector<2x64xf32>
    %73 = arith.addf %71, %72 : vector<2x64xf32>
    %74 = math.tanh %73 : vector<2x64xf32>
    %75 = arith.mulf %70, %74 : vector<2x64xf32>
    %c2_45 = arith.constant 2 : index
    %c32_46 = arith.constant 32 : index
    %c0_47 = arith.constant 0 : index
    %76 = vector.load %arg1[%c2_45, %c32_46, %c0_47] : memref<4x97x256xf32, #tpu.memory_space<vmem>>, vector<1x64x256xf32>
    %77 = vector.shape_cast %76 : vector<1x64x256xf32> to vector<64x256xf32>
    %cst_48 = arith.constant dense<0.000000e+00> : vector<2x256xf32>
    %78 = tpu.matmul %75, %77, %cst_48 {dimension_numbers = #tpu.dot_dimension_numbers<[1], [0], [0], [1], [0, 0, 1, 1], [], []>} : vector<2x64xf32>, vector<64x256xf32>, vector<2x256xf32> -> vector<2x256xf32>
    %79 = arith.addf %26, %78 : vector<2x256xf32>
    %80 = arith.negf %79 : vector<2x256xf32>
    %81 = math.exp %80 : vector<2x256xf32>
    %cst_49 = arith.constant 1.000000e+00 : f32
    %82 = vector.broadcast %cst_49 : f32 to vector<2x256xf32>
    %83 = arith.addf %82, %81 : vector<2x256xf32>
    %84 = arith.divf %82, %83 : vector<2x256xf32>
    %85 = math.tanh %79 : vector<2x256xf32>
    %86 = vector.extract_strided_slice %84 {offsets = [0, 0], sizes = [2, 64], strides = [1, 1]} : vector<2x256xf32> to vector<2x64xf32>
    %87 = vector.extract_strided_slice %84 {offsets = [0, 64], sizes = [2, 64], strides = [1, 1]} : vector<2x256xf32> to vector<2x64xf32>
    %88 = vector.extract_strided_slice %85 {offsets = [0, 128], sizes = [2, 64], strides = [1, 1]} : vector<2x256xf32> to vector<2x64xf32>
    %89 = vector.extract_strided_slice %84 {offsets = [0, 192], sizes = [2, 64], strides = [1, 1]} : vector<2x256xf32> to vector<2x64xf32>
    %90 = arith.mulf %87, %73 : vector<2x64xf32>
    %91 = arith.mulf %86, %88 : vector<2x64xf32>
    %92 = arith.addf %90, %91 : vector<2x64xf32>
    %93 = math.tanh %92 : vector<2x64xf32>
    %94 = arith.mulf %89, %93 : vector<2x64xf32>
    %c3_50 = arith.constant 3 : index
    %c32_51 = arith.constant 32 : index
    %c0_52 = arith.constant 0 : index
    %95 = vector.load %arg1[%c3_50, %c32_51, %c0_52] : memref<4x97x256xf32, #tpu.memory_space<vmem>>, vector<1x64x256xf32>
    %96 = vector.shape_cast %95 : vector<1x64x256xf32> to vector<64x256xf32>
    %cst_53 = arith.constant dense<0.000000e+00> : vector<2x256xf32>
    %97 = tpu.matmul %94, %96, %cst_53 {dimension_numbers = #tpu.dot_dimension_numbers<[1], [0], [0], [1], [0, 0, 1, 1], [], []>} : vector<2x64xf32>, vector<64x256xf32>, vector<2x256xf32> -> vector<2x256xf32>
    %98 = arith.addf %35, %97 : vector<2x256xf32>
    %99 = arith.negf %98 : vector<2x256xf32>
    %100 = math.exp %99 : vector<2x256xf32>
    %cst_54 = arith.constant 1.000000e+00 : f32
    %101 = vector.broadcast %cst_54 : f32 to vector<2x256xf32>
    %102 = arith.addf %101, %100 : vector<2x256xf32>
    %103 = arith.divf %101, %102 : vector<2x256xf32>
    %104 = math.tanh %98 : vector<2x256xf32>
    %105 = vector.extract_strided_slice %103 {offsets = [0, 0], sizes = [2, 64], strides = [1, 1]} : vector<2x256xf32> to vector<2x64xf32>
    %106 = vector.extract_strided_slice %103 {offsets = [0, 64], sizes = [2, 64], strides = [1, 1]} : vector<2x256xf32> to vector<2x64xf32>
    %107 = vector.extract_strided_slice %104 {offsets = [0, 128], sizes = [2, 64], strides = [1, 1]} : vector<2x256xf32> to vector<2x64xf32>
    %108 = vector.extract_strided_slice %103 {offsets = [0, 192], sizes = [2, 64], strides = [1, 1]} : vector<2x256xf32> to vector<2x64xf32>
    %109 = arith.mulf %106, %92 : vector<2x64xf32>
    %110 = arith.mulf %105, %107 : vector<2x64xf32>
    %111 = arith.addf %109, %110 : vector<2x64xf32>
    %112 = math.tanh %111 : vector<2x64xf32>
    %113 = arith.mulf %108, %112 : vector<2x64xf32>
    %c0_55 = arith.constant 0 : index
    %c0_56 = arith.constant 0 : index
    %114 = vector.load %arg2[%c0_55, %c0_56] : memref<257x392xf32, #tpu.memory_space<vmem>>, vector<64x256xf32>
    %c64 = arith.constant 64 : index
    %c0_57 = arith.constant 0 : index
    %115 = vector.load %arg2[%c64, %c0_57] : memref<257x392xf32, #tpu.memory_space<vmem>>, vector<1x256xf32>
    %c0_58 = arith.constant 0 : index
    %c256 = arith.constant 256 : index
    %116 = vector.load %arg2[%c0_58, %c256] : memref<257x392xf32, #tpu.memory_space<vmem>>, vector<256x128xf32>
    %c256_59 = arith.constant 256 : index
    %c256_60 = arith.constant 256 : index
    %117 = vector.load %arg2[%c256_59, %c256_60] : memref<257x392xf32, #tpu.memory_space<vmem>>, vector<1x128xf32>
    %c0_61 = arith.constant 0 : index
    %c384 = arith.constant 384 : index
    %118 = vector.load %arg2[%c0_61, %c384] : memref<257x392xf32, #tpu.memory_space<vmem>>, vector<128x8xf32>
    %c128 = arith.constant 128 : index
    %c384_62 = arith.constant 384 : index
    %119 = vector.load %arg2[%c128, %c384_62] : memref<257x392xf32, #tpu.memory_space<vmem>>, vector<1x8xf32>
    %cst_63 = arith.constant dense<0.000000e+00> : vector<2x256xf32>
    %120 = tpu.matmul %113, %114, %cst_63 {dimension_numbers = #tpu.dot_dimension_numbers<[1], [0], [0], [1], [0, 0, 1, 1], [], []>} : vector<2x64xf32>, vector<64x256xf32>, vector<2x256xf32> -> vector<2x256xf32>
    %121 = vector.broadcast %115 : vector<1x256xf32> to vector<2x256xf32>
    %122 = arith.addf %120, %121 : vector<2x256xf32>
    %cst_64 = arith.constant 0.000000e+00 : f32
    %123 = vector.broadcast %cst_64 : f32 to vector<2x256xf32>
    %124 = arith.cmpf oge, %122, %123 : vector<2x256xf32>
    %cst_65 = arith.constant 0.00999999977 : f32
    %125 = vector.broadcast %cst_65 : f32 to vector<2x256xf32>
    %126 = arith.mulf %125, %122 : vector<2x256xf32>
    %127 = arith.select %124, %122, %126 : vector<2x256xi1>, vector<2x256xf32>
    %cst_66 = arith.constant dense<0.000000e+00> : vector<2x128xf32>
    %128 = tpu.matmul %127, %116, %cst_66 {dimension_numbers = #tpu.dot_dimension_numbers<[1], [0], [0], [1], [0, 0, 1, 1], [], []>} : vector<2x256xf32>, vector<256x128xf32>, vector<2x128xf32> -> vector<2x128xf32>
    %129 = vector.broadcast %117 : vector<1x128xf32> to vector<2x128xf32>
    %130 = arith.addf %128, %129 : vector<2x128xf32>
    %cst_67 = arith.constant 0.000000e+00 : f32
    %131 = vector.broadcast %cst_67 : f32 to vector<2x128xf32>
    %132 = arith.cmpf oge, %130, %131 : vector<2x128xf32>
    %cst_68 = arith.constant 0.00999999977 : f32
    %133 = vector.broadcast %cst_68 : f32 to vector<2x128xf32>
    %134 = arith.mulf %133, %130 : vector<2x128xf32>
    %135 = arith.select %132, %130, %134 : vector<2x128xi1>, vector<2x128xf32>
    %cst_69 = arith.constant dense<0.000000e+00> : vector<2x8xf32>
    %136 = tpu.matmul %135, %118, %cst_69 {dimension_numbers = #tpu.dot_dimension_numbers<[1], [0], [0], [1], [0, 0, 1, 1], [], []>} : vector<2x128xf32>, vector<128x8xf32>, vector<2x8xf32> -> vector<2x8xf32>
    %137 = vector.broadcast %119 : vector<1x8xf32> to vector<2x8xf32>
    %138 = arith.addf %136, %137 : vector<2x8xf32>
    %139 = math.tanh %138 : vector<2x8xf32>
    %c0_70 = arith.constant 0 : index
    %c0_71 = arith.constant 0 : index
    %140 = vector.load %arg3[%c0_70, %c0_71] : memref<2x8xf32, #tpu.memory_space<vmem>>, vector<2x8xf32>
    tpu.vector_store %arg3[%c0_70, %c0_71], %139 {strides = array<i32>} : memref<2x8xf32, #tpu.memory_space<vmem>>, vector<2x8xf32>,
    return
  }
}

</mosaic_0001>

<bundles_post_ra>
// kernel: tpu_custom_call.1
= control target key start
LH: loop header
LB: loop body
LE: loop exit
PB: predicated region body
PF: predicated region fallthrough
CT: control target
= control target key end

     0   :  { %v1639_v7 = vmov 0.0   ;;  %vm37_vm0 = vcmask 261120   ;;  %s2246_s0 = inlined_call_operand.vmem [shape: f32[4,2,32], index: 0, kind: input, shape index: {}]   ;;  %s2247_s1 = inlined_call_operand.vmem [shape: f32[4,97,256], index: 1, kind: input, shape index: {}]   ;;  %s2248_s2 = inlined_call_operand.vmem [shape: f32[257,392], index: 2, kind: input, shape index: {}]   ;;  %s2249_s3 = inlined_call_operand.hbm [shape: f32[2,8], index: 3, kind: output, shape index: {}]  }
   0x1   :  { %v1207_v0 = vld [vmem:[%s2247_s1 + $0x1a8] sm:$0xff]  ;;  %v1209_v1 = vld [vmem:[%s2247_s1 + $0x1b8] sm:$0xff]  ;;  %v1206_v2 = vld [vmem:[%s2247_s1 + $0x1a0] sm:$0xff]  ;;  %301 = vmatprep.mubr.f32.mxu0 %v1639_v7  ;;  %105 = vmatprep.mubr.f32.mxu1 %v1639_v7 }
   0x2   :  { %v1392_v3 = vpack.c.bf16 %v1209_v1, %v1207_v0  ;;  %v1208_v4 = vld [vmem:[%s2247_s1 + $0x1b0] sm:$0xff]  ;;  %v1211_v5 = vld [vmem:[%s2247_s1 + $0x1c8] sm:$0xff]  ;;  %v1213_v6 = vld [vmem:[%s2247_s1 + $0x1d8] sm:$0xff] }
   0x3   :  { %v1394_v8 = vpack.c.bf16 %v1208_v4, %v1206_v2  ;;  %v1396_v9 = vpack.c.bf16 %v1213_v6, %v1211_v5  ;;  %v1210_v10 = vld [vmem:[%s2247_s1 + $0x1c0] sm:$0xff]  ;;  %v1212_v11 = vld [vmem:[%s2247_s1 + $0x1d0] sm:$0xff]  ;;  %v407_v12 = vld [vmem:[%s2247_s1 + $0x48] sm:$0xff] }
   0x4   :  { %1393 = vmatprep.subr.bf16.mxu0 %v1392_v3  ;;  %v409_v13 = vld [vmem:[%s2247_s1 + $0x58] sm:$0xff]  ;;  %v1398_v14 = vpack.c.bf16 %v1212_v11, %v1210_v10  ;;  %v406_v15 = vld [vmem:[%s2247_s1 + $0x40] sm:$0xff]  ;;  %v408_v16 = vld [vmem:[%s2247_s1 + $0x50] sm:$0xff] }
   0x5   :  { %1395 = vmatpush1.bf16.msra.mxu0 %v1394_v8  ;;  %v1408_v17 = vpack.c.bf16 %v409_v13, %v407_v12  ;;  %v411_v18 = vld [vmem:[%s2247_s1 + $0x68] sm:$0xff]  ;;  %v18_v20 = vld [vmem:[%s2247_s1 + $0x18] sm:$0xff]  ;;  %v15_v23 = vld [vmem:[%s2247_s1] sm:$0xff]  ;;  %v1410_v28 = vpack.c.bf16 %v408_v16, %v406_v15 }
   0x6   :  { %1397 = vmatprep.subr.bf16.mxu0 %v1396_v9  ;;  %v16_v19 = vld [vmem:[%s2247_s1 + $0x8] sm:$0xff]  ;;  %v413_v21 = vld [vmem:[%s2247_s1 + $0x78] sm:$0xff]  ;;  %v17_v24 = vld [vmem:[%s2247_s1 + $0x10] sm:$0xff] }
   0x7   :  { %v1376_v22 = vpack.c.bf16 %v18_v20, %v16_v19  ;;  %v1378_v25 = vpack.c.bf16 %v17_v24, %v15_v23  ;;  %v20_v26 = vld [vmem:[%s2247_s1 + $0x28] sm:$0xff]  ;;  %v1215_v27 = vld [vmem:[%s2246_s0 + $0x4] sm:$0x3]  ;;  %v22_v30 = vld [vmem:[%s2247_s1 + $0x38] sm:$0xff]  ;;  %v1412_v31 = vpack.c.bf16 %v413_v21, %v411_v18 }
   0x8   :  { %v410_v29 = vld [vmem:[%s2247_s1 + $0x60] sm:$0xff]  ;;  %v412_v32 = vld [vmem:[%s2247_s1 + $0x70] sm:$0xff]  ;;  %v1380_v33 = vpack.c.bf16 %v22_v30, %v20_v26  ;;  %v415_v36 = vld [vmem:[%s2247_s1 + $0x88] sm:$0xff] }
   0x9   :  { %1399 = vmatpush1.bf16.msra.mxu0 %v1398_v14  ;;  %1377 = vmatprep.subr.bf16.mxu1 %v1376_v22  ;;  %v19_v34 = vld [vmem:[%s2247_s1 + $0x20] sm:$0xff]  ;;  %v21_v35 = vld [vmem:[%s2247_s1 + $0x30] sm:$0xff]  ;;  %v417_v37 = vld [vmem:[%s2247_s1 + $0x98] sm:$0xff] }
   0xa   :  { %1409 = vmatprep.subr.bf16.mxu0 %v1408_v17  ;;  %1379 = vmatpush1.bf16.msra.mxu1 %v1378_v25  ;;  %v1382_v38 = vpack.c.bf16 %v21_v35, %v19_v34 }
   0xb   :  { %1381 = vmatprep.subr.bf16.mxu1 %v1380_v33 }
   0xc   :  { %1216 = vmatmul.mubr.msk.f32.vlgmr.msra.gmra.mrb[0].mxu0 %vm37_vm0, %v1215_v27 }
   0xd   :  { %8 = vsyncpa [#allocation3], 0  ;;  %1411 = vmatpush1.bf16.msra.mxu0 %v1410_v28  ;;  %v1414_v39 = vpack.c.bf16 %v412_v32, %v410_v29  ;;  %490 = vmatprep.mubr.f32.mxu0 %v1639_v7  ;;  %v1416_v40 = vpack.c.bf16 %v417_v37, %v415_v36  ;;  %v414_v41 = vld [vmem:[%s2247_s1 + $0x80] sm:$0xff]  ;;  %v416_v42 = vld [vmem:[%s2247_s1 + $0x90] sm:$0xff]  ;;  %v27_v51 = vlaneseq  ;;  %s1640_s28 = smov 64   ;;  %vm422_vm1 = vcmask 523264  }
   0xe   :  { %1413 = vmatprep.subr.bf16.mxu0 %v1412_v31  ;;  %1383 = vmatpush1.bf16.msra.mxu1 %v1382_v38  ;;  %v25_v43 = vld [vmem:[%s2246_s0] sm:$0x3]  ;;  %v419_v44 = vld [vmem:[%s2247_s1 + $0xa8] sm:$0xff]  ;;  %v421_v45 = vld [vmem:[%s2247_s1 + $0xb8] sm:$0xff]  ;;  %v1418_v46 = vpack.c.bf16 %v416_v42, %v414_v41  ;;  %vm1642_vm4 = vmmov 0   ;;  %vm1174_vm6 = vcmask 58368  }
   0xf   :  { %v1420_v47 = vpack.c.bf16 %v421_v45, %v419_v44  ;;  %v418_v48 = vld [vmem:[%s2247_s1 + $0xa0] sm:$0xff]  ;;  %v420_v49 = vld [vmem:[%s2247_s1 + $0xb0] sm:$0xff]  ;;  %v28_v52 = vshrl.u32 %v27_v51, 7  ;;  %v1196_v9 = vld [vmem:[%s2247_s1 + $0xd8] sm:$0xff] }
  0x10   :  { %v1422_v50 = vpack.c.bf16 %v420_v49, %v418_v48  ;;  %v1193_v55 = vld [vmem:[%s2247_s1 + $0xc0] ss:$8 sm:$0x3]  ;;  %v1195_v11 = vld [vmem:[%s2247_s1 + $0xd0] sm:$0xff]  ;;  %v1200_v14 = vld [vmem:[%s2247_s1 + $0xf8] sm:$0xff] }
  0x11   :  { %1415 = vmatpush1.bf16.msra.mxu0 %v1414_v39  ;;  %1194 = vmatmul.mubr.msk.f32.vlgmr.msra.gmra.mrb[0].mxu1 %vm37_vm0, %v25_v43  ;;  %v1774_v53 = vsub.s32 0, %v28_v52  ;;  %v1779_v56 = vsub.s32 1, %v28_v52  ;;  %v1198_v10 = vld [vmem:[%s2247_s1 + $0xe8] sm:$0xff]  ;;  %v1197_v13 = vld [vmem:[%s2247_s1 + $0xe0] sm:$0xff]  ;;  %v1199_v18 = vld [vmem:[%s2247_s1 + $0xf0] sm:$0xff] }
  0x12   :  { %1417 = vmatprep.subr.bf16.mxu0 %v1416_v40  ;;  %203 = vmatprep.mubr.f32.mxu1 %v1639_v7  ;;  %v1384_v12 = vpack.c.bf16 %v1198_v10, %v1196_v9  ;;  %v1202_v15 = vld [vmem:[%s2247_s1 + $0x108] sm:$0xff]  ;;  %v1386_v16 = vpack.c.bf16 %v1197_v13, %v1195_v11  ;;  %v1201_v19 = vld [vmem:[%s2247_s1 + $0x100] sm:$0xff]  ;;  %v1218_v20 = vld [vmem:[%s2247_s1 + $0x278] sm:$0xff] }
  0x13   :  { %v30_v58 = vrot.slane %v1193_v55, %v1774_v53  ;;  %v34_v59 = vrot.slane %v1193_v55, %v1779_v56  ;;  %v1388_v17 = vpack.c.bf16 %v1202_v15, %v1200_v14  ;;  %v1220_v21 = vld [vmem:[%s2247_s1 + $0x288] sm:$0xff]  ;;  %v1390_v22 = vpack.c.bf16 %v1201_v19, %v1199_v18  ;;  %v1217_v24 = vld [vmem:[%s2247_s1 + $0x270] sm:$0xff]  ;;  %v1219_v25 = vld [vmem:[%s2247_s1 + $0x280] sm:$0xff] }
  0x14   :  { %1385 = vmatprep.subr.bf16.mxu1 %v1384_v12  ;;  %v1400_v23 = vpack.c.bf16 %v1220_v21, %v1218_v20  ;;  %v1222_v26 = vld [vmem:[%s2247_s1 + $0x298] sm:$0xff]  ;;  %v1224_v27 = vld [vmem:[%s2247_s1 + $0x2a8] sm:$0xff]  ;;  %v1204_v28 = vld [vmem:[%s2246_s0 + $0x2] sm:$0x3]  ;;  %v1402_v29 = vpack.c.bf16 %v1219_v25, %v1217_v24 }
  0x15   :  { %1419 = vmatpush1.bf16.msra.mxu0 %v1418_v46  ;;  %1387 = vmatpush1.bf16.msra.mxu1 %v1386_v16  ;;  %v1404_v30 = vpack.c.bf16 %v1224_v27, %v1222_v26  ;;  %v1221_v31 = vld [vmem:[%s2247_s1 + $0x290] sm:$0xff]  ;;  %v1223_v32 = vld [vmem:[%s2247_s1 + $0x2a0] sm:$0xff]  ;;  %v1231_v33 = vld [vmem:[%s2247_s1 + $0x118] sm:$0xff] }
  0x16   :  { %1421 = vmatprep.subr.bf16.mxu0 %v1420_v47  ;;  %1389 = vmatprep.subr.bf16.mxu1 %v1388_v17  ;;  %v1233_v34 = vld [vmem:[%s2247_s1 + $0x128] sm:$0xff]  ;;  %v1406_v35 = vpack.c.bf16 %v1223_v32, %v1221_v31  ;;  %v1230_v37 = vld [vmem:[%s2247_s1 + $0x110] sm:$0xff]  ;;  %v1232_v38 = vld [vmem:[%s2247_s1 + $0x120] sm:$0xff] }
  0x17   :  { %v1424_v36 = vpack.c.bf16 %v1233_v34, %v1231_v33  ;;  %v1235_v39 = vld [vmem:[%s2247_s1 + $0x138] sm:$0xff]  ;;  %v1237_v40 = vld [vmem:[%s2247_s1 + $0x148] sm:$0xff]  ;;  %v1226_v41 = vld [vmem:[%s2246_s0 + $0x6] sm:$0x3]  ;;  %v1426_v42 = vpack.c.bf16 %v1232_v38, %v1230_v37 }
  0x18   :  { %v1428_v43 = vpack.c.bf16 %v1237_v40, %v1235_v39  ;;  %v1234_v44 = vld [vmem:[%s2247_s1 + $0x130] sm:$0xff]  ;;  %v1236_v45 = vld [vmem:[%s2247_s1 + $0x140] sm:$0xff]  ;;  %v1239_v46 = vld [vmem:[%s2247_s1 + $0x158] sm:$0xff] }
  0x19   :  { %1423 = vmatpush1.bf16.msra.mxu0 %v1422_v50  ;;  %1391 = vmatpush1.bf16.msra.mxu1 %v1390_v22  ;;  %v1241_v47 = vld [vmem:[%s2247_s1 + $0x168] sm:$0xff]  ;;  %v1430_v48 = vpack.c.bf16 %v1236_v45, %v1234_v44  ;;  %v1238_v50 = vld [vmem:[%s2247_s1 + $0x150] sm:$0xff]  ;;  %v1240_v51 = vld [vmem:[%s2247_s1 + $0x160] sm:$0xff] }
  0x1a   :  { %1401 = vmatprep.subr.bf16.mxu1 %v1400_v23  ;;  %v1432_v49 = vpack.c.bf16 %v1241_v47, %v1239_v46  ;;  %v1243_v52 = vld [vmem:[%s2247_s1 + $0x178] sm:$0xff]  ;;  %v1434_v55 = vpack.c.bf16 %v1240_v51, %v1238_v50  ;;  %v1250_v21 = vld [vmem:[%s2247_s1 + $0x1e8] sm:$0xff]  ;;  %v1249_v23 = vld [vmem:[%s2247_s1 + $0x1e0] sm:$0xff] }
  0x1b   :  { %v1252_v22 = vld [vmem:[%s2247_s1 + $0x1f8] sm:$0xff]  ;;  %v1251_v25 = vld [vmem:[%s2247_s1 + $0x1f0] sm:$0xff]  ;;  %v1254_v26 = vld [vmem:[%s2247_s1 + $0x208] sm:$0xff] }
  0x1c   :  { %491 = vmatmul.mubr.f32.vlgmr.msra.gmra.mrb[2].mxu0 %v1639_v7  ;;  %1205 = vmatmul.mubr.msk.f32.vlgmr.msra.gmra.mrb[2].mxu1 %vm37_vm0, %v1204_v28  ;;  %v1440_v24 = vpack.c.bf16 %v1252_v22, %v1250_v21  ;;  %v1256_v27 = vld [vmem:[%s2247_s1 + $0x218] sm:$0xff]  ;;  %v1442_v28 = vpack.c.bf16 %v1251_v25, %v1249_v23  ;;  %v1255_v31 = vld [vmem:[%s2247_s1 + $0x210] sm:$0xff]  ;;  %v1258_v32 = vld [vmem:[%s2247_s1 + $0x228] sm:$0xff] }
  0x1d   :  { %722 = vmatprep.mubr.f32.mxu0 %v1639_v7  ;;  %1403 = vmatpush1.bf16.msra.mxu1 %v1402_v29  ;;  %v1444_v29 = vpack.c.bf16 %v1256_v27, %v1254_v26  ;;  %v1260_v33 = vld [vmem:[%s2247_s1 + $0x238] sm:$0xff]  ;;  %v1259_v37 = vld [vmem:[%s2247_s1 + $0x230] sm:$0xff]  ;;  %v1262_v38 = vld [vmem:[%s2247_s1 + $0x248] sm:$0xff] }
  0x1e   :  { %399 = vmatprep.mubr.f32.mxu1 %v1639_v7  ;;  %1405 = vmatprep.subr.bf16.mxu1 %v1404_v30  ;;  %v1253_v30 = vld [vmem:[%s2247_s1 + $0x200] sm:$0xff]  ;;  %v1264_v39 = vld [vmem:[%s2247_s1 + $0x258] sm:$0xff]  ;;  %v1276_v22 = vld [vmem:[%s2247_s1 + $0x2f0] sm:$0xff] }
  0x1f   :  { %1441 = vmatprep.subr.bf16.mxu0 %v1440_v24  ;;  %v1446_v34 = vpack.c.bf16 %v1255_v31, %v1253_v30  ;;  %v1278_v23 = vld [vmem:[%s2247_s1 + $0x300] sm:$0xff]  ;;  %v1281_v24 = vld [vmem:[%s2247_s1 + $0x318] sm:$0xff]  ;;  %v1283_v25 = vld [vmem:[%s2247_s1 + $0x328] sm:$0xff] }
  0x20   :  { %1443 = vmatpush1.bf16.msra.mxu0 %v1442_v28  ;;  %v1466_v26 = vpack.c.bf16 %v1278_v23, %v1276_v22  ;;  %v1468_v27 = vpack.c.bf16 %v1283_v25, %v1281_v24  ;;  %v1280_v28 = vld [vmem:[%s2247_s1 + $0x310] sm:$0xff] }
  0x21   :  { %1407 = vmatpush1.bf16.msra.mxu1 %v1406_v35  ;;  %1445 = vmatprep.subr.bf16.mxu0 %v1444_v29  ;;  %v1448_v35 = vpack.c.bf16 %v1260_v33, %v1258_v32  ;;  %v1282_v29 = vld [vmem:[%s2247_s1 + $0x320] sm:$0xff]  ;;  %v903_v23 = vld [vmem:[%s2248_s2 + $0x210] sm:$0xff] }
  0x22   :  { %1425 = vmatprep.subr.bf16.mxu1 %v1424_v36  ;;  %v1257_v36 = vld [vmem:[%s2247_s1 + $0x220] sm:$0xff]  ;;  %v1470_v30 = vpack.c.bf16 %v1282_v29, %v1280_v28  ;;  %v904_v24 = vld [vmem:[%s2248_s2 + $0x230] sm:$0xff] }
  0x23   :  { %v1450_v40 = vpack.c.bf16 %v1259_v37, %v1257_v36  ;;  %v887_v25 = vld [vmem:[%s2248_s2 + $0x10] sm:$0xff] }
  0x24   :  { %1227 = vmatmul.mubr.msk.f32.vlgmr.msra.gmra.mrb[4].mxu1 %vm37_vm0, %v1226_v41  ;;  %1447 = vmatpush1.bf16.msra.mxu0 %v1446_v34  ;;  %v1452_v41 = vpack.c.bf16 %v1264_v39, %v1262_v38  ;;  %v905_v28 = vld [vmem:[%s2248_s2 + $0x250] sm:$0xff] }
  0x25   :  { %1427 = vmatpush1.bf16.msra.mxu1 %v1426_v42  ;;  %606 = vmatprep.mubr.f32.mxu1 %v1639_v7  ;;  %v1261_v42 = vld [vmem:[%s2247_s1 + $0x240] sm:$0xff]  ;;  %v906_v29 = vld [vmem:[%s2248_s2 + $0x270] sm:$0xff] }
  0x26   :  { %1429 = vmatprep.subr.bf16.mxu1 %v1428_v43  ;;  %1449 = vmatprep.subr.bf16.mxu0 %v1448_v35  ;;  %v1263_v43 = vld [vmem:[%s2247_s1 + $0x250] sm:$0xff] }
  0x27   :  { %v1454_v44 = vpack.c.bf16 %v1263_v43, %v1261_v42 }
  0x28   :  { %1451 = vmatpush1.bf16.msra.mxu0 %v1450_v40 }
  0x29   :  { %1431 = vmatpush1.bf16.msra.mxu1 %v1430_v48  ;;  %1453 = vmatprep.subr.bf16.mxu0 %v1452_v41  ;;  %v1225_v41 = vld [vmem:[%s2247_s1 + $0x330] ss:$8 sm:$0x3] }
  0x2a   :  { %1433 = vmatprep.subr.bf16.mxu1 %v1432_v49  ;;  %v325_v42 = vrot.slane %v1225_v41, %v1774_v53 }
  0x2c   :  { %1455 = vmatpush1.bf16.msra.mxu0 %v1454_v44 }
  0x2d   :  { %1435 = vmatpush1.bf16.msra.mxu1 %v1434_v55 }
  0xe4   :  { %v107_v54 = vpop.f32.mrb[0].mxu1 }
  0xe5   :  { %v109_v57 = vpop.f32.mrb[1].mxu1  ;;  %v108_v60 = vadd.f32 %v107_v54, %v30_v58  ;;  %v1245_v54 = vld [vmem:[%s2247_s1 + $0x188] sm:$0xff]  ;;  %v1242_v58 = vld [vmem:[%s2247_s1 + $0x170] sm:$0xff] }
  0xe6   :  { %v110_v61 = vadd.f32 %v109_v57, %v34_v59  ;;  %v1436_v57 = vpack.c.bf16 %v1245_v54, %v1243_v52  ;;  %v1244_v59 = vld [vmem:[%s2247_s1 + $0x180] sm:$0xff] }
  0xe8   :  { %1437 = vmatprep.subr.bf16.mxu1 %v1436_v57  ;;  %v1214_v57 = vld [vmem:[%s2247_s1 + $0x260] ss:$8 sm:$0x3] }
  0xef   :  { %v492_v62 = vpop.f32.mrb[2].mxu0 }
  0xf0   :  { %v497_v63 = vadd.f32 %v492_v62, %v108_v60  ;;  %v494_v0 = vpop.f32.mrb[3].mxu0  ;;  %v1438_v60 = vpack.c.bf16 %v1244_v59, %v1242_v58  ;;  %v227_v58 = vrot.slane %v1214_v57, %v1774_v53 }
  0xf1   :  { %v1783_v1 = vadd.f32 %v494_v0, %v110_v61 }
  0xf2   :  { %v1228_v2 = vmul.f32 -1.442695, %v497_v63  ;;  %1439 = vmatpush1.bf16.msra.mxu1 %v1438_v60 }
  0xf3   :  { %v1229_v61 = vmul.f32 -1.442695, %v1783_v1 }
  0xf4   :  { %1565 = vpow2.f32 %v1228_v2 }
  0xf5   :  { %1567 = vtanh.f32 %v1783_v1  ;;  %v1203_v1 = vld [vmem:[%s2247_s1 + $0x190] ss:$8 sm:$0x3] }
  0xf6   :  { %v133_v14 = vrot.slane %v1203_v1, %v1779_v56 }
  0xfe   :  { %v1566_v3 = vpop.eup %1565 }
  0xff   :  { %v505_v4 = vadd.f32 1.0, %v1566_v3  ;;  %v1568_v5 = vpop.eup %1567 }
 0x101   :  { %1569 = vrcp.f32 %v505_v4 }
 0x102   :  { %1571 = vpow2.f32 %v1229_v61 }
 0x10b   :  { %v1786_v6 = vpop.eup %1569 }
 0x10c   :  { %v513_v8 = vmul.f32 %v1786_v6, %v1568_v5  ;;  %v1572_v62 = vpop.eup %1571  ;;  %v512_v0 = vmul.f32 0.0, %v1786_v6  ;;  %v129_v6 = vrot.slane %v1203_v1, %v1774_v53  ;;  %v1271_v1 = vld [vmem:[%s2247_s1 + $0x2c8] sm:$0xff] }
 0x10d   :  { %v506_v63 = vadd.f32 1.0, %v1572_v62 }
 0x10e   :  { %515 = vrot.lane.b32.xlu0 %v513_v8, %s1640_s28 }
 0x10f   :  { %1573 = vrcp.f32 %v506_v63  ;;  %v231_v63 = vrot.slane %v1214_v57, %v1779_v56  ;;  %v872_v57 = vld [vmem:[%s2248_s2 + $0x28] sm:$0xff] }
 0x119   :  { %v1574_v4 = vpop.eup %1573 }
 0x180   :  { %v516_v2 = vpop.permute.xlu0 %515 }
 0x181   :  { %v1898_v3 = vadd.f32 %v516_v2, %v512_v0 }
 0x183   :  { %1575 = vtanh.f32 %v1898_v3 }
 0x18d   :  { %v1576_v5 = vpop.eup %1575 }
 0x18e   :  { %v520_v8 = vmul.f32 %v1576_v5, %v1574_v4 }
 0x190   :  { %538 = vrot.lane.b32.xlu0 %v520_v8, %s1640_s28 }
 0x202   :  { %v539_v9 = vpop.permute.xlu0 %538 }
 0x203   :  { %1246 = vmatmul.mubr.msk.f32.vlgmr.msra.gmra.mrb[2].mxu1 %vm422_vm1, %v539_v9  ;;  %v1269_v9 = vld [vmem:[%s2247_s1 + $0x2b8] sm:$0xff] }
 0x204   :  { %838 = vmatprep.mubr.f32.mxu1 %v1639_v7 }
 0x2d6   :  { %v608_v10 = vpop.f32.mrb[2].mxu1 }
 0x2d7   :  { %v1548_v11 = vadd.f32 %v608_v10, %v129_v6  ;;  %v610_v12 = vpop.f32.mrb[3].mxu1  ;;  %v1268_v6 = vld [vmem:[%s2247_s1 + $0x2b0] sm:$0xff]  ;;  %v1456_v10 = vpack.c.bf16 %v1271_v1, %v1269_v9  ;;  %v877_v1 = vld [vmem:[%s2248_s2 + $0x80] sm:$0xff] }
 0x2d8   :  { %v1549_v15 = vadd.f32 %v610_v12, %v133_v14  ;;  %v1273_v12 = vld [vmem:[%s2247_s1 + $0x2d8] sm:$0xff] }
 0x2d9   :  { %v1247_v13 = vmul.f32 -1.442695, %v1548_v11  ;;  %v1270_v11 = vld [vmem:[%s2247_s1 + $0x2c0] sm:$0xff]  ;;  %1457 = vmatprep.subr.bf16.mxu1 %v1456_v10  ;;  %v882_v10 = vld [vmem:[%s2248_s2 + $0xc8] sm:$0xff] }
 0x2da   :  { %v1248_v45 = vmul.f32 -1.442695, %v1549_v15  ;;  %v1458_v14 = vpack.c.bf16 %v1270_v11, %v1268_v6  ;;  %v879_v6 = vld [vmem:[%s2248_s2 + $0xa0] sm:$0xff]  ;;  %v884_v11 = vld [vmem:[%s2248_s2 + $0xe8] sm:$0xff] }
 0x2db   :  { %1577 = vpow2.f32 %v1247_v13  ;;  %v1275_v13 = vld [vmem:[%s2247_s1 + $0x2e8] sm:$0xff] }
 0x2dc   :  { %1579 = vtanh.f32 %v1549_v15  ;;  %v1460_v15 = vpack.c.bf16 %v1275_v13, %v1273_v12  ;;  %1459 = vmatpush1.bf16.msra.mxu1 %v1458_v14  ;;  %v1482_v12 = vpack.c.bf16 %v879_v6, %v877_v1  ;;  %v1484_v13 = vpack.c.bf16 %v884_v11, %v882_v10  ;;  %v881_v14 = vld [vmem:[%s2248_s2 + $0xc0] sm:$0xff]  ;;  %v917_v1 = vld [vmem:[%s2248_s2 + $0x3d0] sm:$0xff] }
 0x2dd   :  { %v918_v6 = vld [vmem:[%s2248_s2 + $0x3f0] sm:$0xff] }
 0x2de   :  { %1461 = vmatprep.subr.bf16.mxu1 %v1460_v15  ;;  %v883_v15 = vld [vmem:[%s2248_s2 + $0xe0] sm:$0xff]  ;;  %v1516_v10 = vpack.c.bf16 %v918_v6, %v917_v1  ;;  %v901_v11 = vld [vmem:[%s2248_s2 + $0x1d0] sm:$0xff] }
 0x2e5   :  { %v1578_v16 = vpop.eup %1577 }
 0x2e6   :  { %v621_v17 = vadd.f32 1.0, %v1578_v16  ;;  %v1580_v18 = vpop.eup %1579  ;;  %v1272_v16 = vld [vmem:[%s2247_s1 + $0x2d0] sm:$0xff] }
 0x2e8   :  { %1581 = vrcp.f32 %v621_v17  ;;  %v1274_v17 = vld [vmem:[%s2247_s1 + $0x2e0] sm:$0xff] }
 0x2e9   :  { %1583 = vpow2.f32 %v1248_v45 }
 0x2f2   :  { %v1582_v19 = vpop.eup %1581 }
 0x2f3   :  { %v629_v20 = vmul.f32 %v1582_v19, %v1580_v18  ;;  %v1584_v46 = vpop.eup %1583  ;;  %v628_v48 = vmul.f32 %v1582_v19, %v1898_v3  ;;  %v1277_v18 = vld [vmem:[%s2247_s1 + $0x2f8] sm:$0xff]  ;;  %v1279_v19 = vld [vmem:[%s2247_s1 + $0x308] sm:$0xff] }
 0x2f4   :  { %v622_v47 = vadd.f32 1.0, %v1584_v46  ;;  %v1464_v21 = vpack.c.bf16 %v1279_v19, %v1277_v18 }
 0x2f5   :  { %631 = vrot.lane.b32.xlu1 %v629_v20, %s1640_s28  ;;  %v1462_v20 = vpack.c.bf16 %v1274_v17, %v1272_v16  ;;  %v1486_v16 = vpack.c.bf16 %v883_v15, %v881_v14  ;;  %v920_v14 = vld [vmem:[%s2248_s2 + $0x18] sm:$0xff] }
 0x2f6   :  { %1585 = vrcp.f32 %v622_v47  ;;  %v329_v47 = vrot.slane %v1225_v41, %v1779_v56  ;;  %v910_v41 = vld [vmem:[%s2248_s2 + $0x2f0] sm:$0xff]  ;;  %v921_v15 = vld [vmem:[%s2248_s2 + $0x38] sm:$0xff] }
 0x2f7   :  { %1463 = vmatpush1.bf16.msra.mxu1 %v1462_v20 }
 0x2f8   :  { %1465 = vmatprep.subr.bf16.mxu1 %v1464_v21 }
 0x2fb   :  { %1467 = vmatpush1.bf16.msra.mxu1 %v1466_v26  ;;  %v1488_v26 = vpack.c.bf16 %v904_v24, %v903_v23  ;;  %v926_v24 = vld [vmem:[%s2248_s2 + $0xd8] sm:$0xff] }
 0x2fc   :  { %1469 = vmatprep.subr.bf16.mxu1 %v1468_v27  ;;  %v888_v27 = vld [vmem:[%s2248_s2 + $0x30] sm:$0xff] }
 0x2ff   :  { %1471 = vmatpush1.bf16.msra.mxu1 %v1470_v30  ;;  %v1490_v30 = vpack.c.bf16 %v888_v27, %v887_v25  ;;  %v927_v25 = vld [vmem:[%s2248_s2 + $0xf8] sm:$0xff] }
 0x300   :  { %v1586_v51 = vpop.eup %1585  ;;  %1489 = vmatprep.subr.bf16.mxu1 %v1488_v26  ;;  %v1530_v26 = vpack.c.bf16 %v927_v25, %v926_v24  ;;  %v928_v27 = vld [vmem:[%s2248_s2 + $0x118] sm:$0xff] }
 0x367   :  { %v632_v49 = vpop.permute.xlu1 %631 }
 0x368   :  { %v1959_v50 = vadd.f32 %v632_v49, %v628_v48 }
 0x36a   :  { %1587 = vtanh.f32 %v1959_v50 }
 0x374   :  { %v1588_v52 = vpop.eup %1587 }
 0x375   :  { %v636_v54 = vmul.f32 %v1588_v52, %v1586_v51 }
 0x377   :  { %654 = vrot.lane.b32.xlu1 %v636_v54, %s1640_s28 }
 0x3e9   :  { %v655_v55 = vpop.permute.xlu1 %654 }
 0x3ea   :  { %1265 = vmatmul.mubr.msk.f32.vlgmr.msra.gmra.mrb[0].mxu0 %vm422_vm1, %v655_v55  ;;  %v870_v55 = vld [vmem:[%s2248_s2 + $0x8] sm:$0xff] }
 0x3eb   :  { %1017 = vmatprep.mubr.f32.mxu0 %v1639_v7 }
 0x4bd   :  { %v724_v59 = vpop.f32.mrb[0].mxu0 }
 0x4be   :  { %v1550_v60 = vadd.f32 %v724_v59, %v227_v58  ;;  %v726_v61 = vpop.f32.mrb[1].mxu0  ;;  %v869_v58 = vld [vmem:[%s2248_s2] sm:$0xff]  ;;  %v1472_v59 = vpack.c.bf16 %v872_v57, %v870_v55  ;;  %v896_v55 = vld [vmem:[%s2248_s2 + $0x130] sm:$0xff] }
 0x4bf   :  { %v1551_v0 = vadd.f32 %v726_v61, %v231_v63  ;;  %v874_v61 = vld [vmem:[%s2248_s2 + $0x48] sm:$0xff]  ;;  %v913_v57 = vld [vmem:[%s2248_s2 + $0x350] sm:$0xff] }
 0x4c0   :  { %v1266_v62 = vmul.f32 -1.442695, %v1550_v60  ;;  %v871_v60 = vld [vmem:[%s2248_s2 + $0x20] sm:$0xff]  ;;  %1473 = vmatprep.subr.bf16.mxu0 %v1472_v59 }
 0x4c1   :  { %v1267_v31 = vmul.f32 -1.442695, %v1551_v0  ;;  %v1474_v63 = vpack.c.bf16 %v871_v60, %v869_v58  ;;  %v914_v58 = vld [vmem:[%s2248_s2 + $0x370] sm:$0xff] }
 0x4c2   :  { %1589 = vpow2.f32 %v1266_v62  ;;  %v876_v62 = vld [vmem:[%s2248_s2 + $0x68] sm:$0xff]  ;;  %v1508_v60 = vpack.c.bf16 %v914_v58, %v913_v57  ;;  %v936_v57 = vld [vmem:[%s2248_s2 + $0x218] ss:$0 sm:$0xff] }
 0x4c3   :  { %1591 = vtanh.f32 %v1551_v0  ;;  %v1476_v0 = vpack.c.bf16 %v876_v62, %v874_v61  ;;  %1475 = vmatpush1.bf16.msra.mxu0 %v1474_v63  ;;  %v897_v61 = vld [vmem:[%s2248_s2 + $0x150] sm:$0xff] }
 0x4c4   :  { %v898_v62 = vld [vmem:[%s2248_s2 + $0x170] sm:$0xff] }
 0x4c5   :  { %1477 = vmatprep.subr.bf16.mxu0 %v1476_v0  ;;  %v1510_v63 = vpack.c.bf16 %v898_v62, %v897_v61 }
 0x4cc   :  { %v1590_v2 = vpop.eup %1589 }
 0x4cd   :  { %v737_v3 = vadd.f32 1.0, %v1590_v2  ;;  %v1592_v4 = vpop.eup %1591  ;;  %v873_v2 = vld [vmem:[%s2248_s2 + $0x40] sm:$0xff] }
 0x4cf   :  { %1593 = vrcp.f32 %v737_v3  ;;  %v875_v3 = vld [vmem:[%s2248_s2 + $0x60] sm:$0xff] }
 0x4d0   :  { %1595 = vpow2.f32 %v1267_v31  ;;  %v1492_v31 = vpack.c.bf16 %v906_v29, %v905_v28  ;;  %v929_v28 = vld [vmem:[%s2248_s2 + $0x138] sm:$0xff] }
 0x4d1   :  { %v1533_v29 = vpack.c.bf16 %v929_v28, %v928_v27 }
 0x4d9   :  { %v1594_v5 = vpop.eup %1593 }
 0x4da   :  { %v745_v8 = vmul.f32 %v1594_v5, %v1592_v4  ;;  %v1596_v32 = vpop.eup %1595  ;;  %v744_v34 = vmul.f32 %v1594_v5, %v1959_v50  ;;  %v878_v4 = vld [vmem:[%s2248_s2 + $0x88] sm:$0xff] }
 0x4db   :  { %v738_v33 = vadd.f32 1.0, %v1596_v32  ;;  %v880_v5 = vld [vmem:[%s2248_s2 + $0xa8] sm:$0xff]  ;;  %v889_v32 = vld [vmem:[%s2248_s2 + $0x50] sm:$0xff] }
 0x4dc   :  { %747 = vrot.lane.b32.xlu0 %v745_v8, %s1640_s28  ;;  %v1478_v8 = vpack.c.bf16 %v875_v3, %v873_v2  ;;  %v1480_v9 = vpack.c.bf16 %v880_v5, %v878_v4  ;;  %v915_v2 = vld [vmem:[%s2248_s2 + $0x390] sm:$0xff] }
 0x4dd   :  { %1597 = vrcp.f32 %v738_v33  ;;  %v890_v33 = vld [vmem:[%s2248_s2 + $0x70] sm:$0xff] }
 0x4de   :  { %1479 = vmatpush1.bf16.msra.mxu0 %v1478_v8  ;;  %v916_v3 = vld [vmem:[%s2248_s2 + $0x3b0] sm:$0xff] }
 0x4df   :  { %1481 = vmatprep.subr.bf16.mxu0 %v1480_v9  ;;  %v1512_v4 = vpack.c.bf16 %v916_v3, %v915_v2  ;;  %v899_v5 = vld [vmem:[%s2248_s2 + $0x190] sm:$0xff] }
 0x4e0   :  { %v900_v8 = vld [vmem:[%s2248_s2 + $0x1b0] sm:$0xff] }
 0x4e1   :  { %v1514_v9 = vpack.c.bf16 %v900_v8, %v899_v5 }
 0x4e2   :  { %1483 = vmatpush1.bf16.msra.mxu0 %v1482_v12  ;;  %v902_v12 = vld [vmem:[%s2248_s2 + $0x1f0] sm:$0xff] }
 0x4e3   :  { %1485 = vmatprep.subr.bf16.mxu0 %v1484_v13  ;;  %v1518_v13 = vpack.c.bf16 %v902_v12, %v901_v11 }
 0x4e6   :  { %1487 = vmatpush1.bf16.msra.mxu0 %v1486_v16  ;;  %v922_v16 = vld [vmem:[%s2248_s2 + $0x58] sm:$0xff] }
 0x4e7   :  { %v1598_v37 = vpop.eup %1597 }
 0x54e   :  { %v748_v35 = vpop.permute.xlu0 %747 }
 0x54f   :  { %v750_v36 = vadd.f32 %v748_v35, %v744_v34  ;;  %v907_v34 = vld [vmem:[%s2248_s2 + $0x290] sm:$0xff] }
 0x550   :  { %v908_v35 = vld [vmem:[%s2248_s2 + $0x2b0] sm:$0xff] }
 0x551   :  { %1599 = vtanh.f32 %v750_v36 }
 0x55b   :  { %v1600_v38 = vpop.eup %1599 }
 0x55c   :  { %v752_v39 = vmul.f32 %v1600_v38, %v1598_v37  ;;  %v1496_v37 = vpack.c.bf16 %v908_v35, %v907_v34  ;;  %v891_v38 = vld [vmem:[%s2248_s2 + $0x90] sm:$0xff] }
 0x55e   :  { %770 = vrot.lane.b32.xlu1 %v752_v39, %s1640_s28  ;;  %v892_v39 = vld [vmem:[%s2248_s2 + $0xb0] sm:$0xff] }
 0x5d0   :  { %v771_v40 = vpop.permute.xlu1 %770 }
 0x5d1   :  { %1284 = vmatmul.mubr.msk.f32.vlgmr.msra.gmra.mrb[4].mxu1 %vm422_vm1, %v771_v40  ;;  %v909_v40 = vld [vmem:[%s2248_s2 + $0x2d0] sm:$0xff] }
 0x5d2   :  { %1491 = vmatpush3.bf16.msra.mxu1 %v1490_v30  ;;  %v930_v30 = vld [vmem:[%s2248_s2 + $0x158] sm:$0xff] }
 0x5d3   :  { %1493 = vmatprep.subr.bf16.mxu1 %v1492_v31  ;;  %v931_v31 = vld [vmem:[%s2248_s2 + $0x178] sm:$0xff] }
 0x6a4   :  { %v840_v43 = vpop.f32.mrb[4].mxu1 }
 0x6a5   :  { %v1552_v44 = vadd.f32 %v840_v43, %v325_v42  ;;  %v842_v45 = vpop.f32.mrb[5].mxu1  ;;  %v1498_v42 = vpack.c.bf16 %v892_v39, %v891_v38 }
 0x6a6   :  { %v1553_v48 = vadd.f32 %v842_v45, %v329_v47  ;;  %v893_v45 = vld [vmem:[%s2248_s2 + $0xd0] sm:$0xff] }
 0x6a7   :  { %v1285_v46 = vmul.f32 -1.442695, %v1552_v44  ;;  %v1500_v44 = vpack.c.bf16 %v910_v41, %v909_v40 }
 0x6a8   :  { %v1286_v17 = vmul.f32 -1.442695, %v1553_v48 }
 0x6a9   :  { %1601 = vpow2.f32 %v1285_v46  ;;  %v894_v46 = vld [vmem:[%s2248_s2 + $0xf0] sm:$0xff] }
 0x6aa   :  { %1603 = vtanh.f32 %v1553_v48  ;;  %v911_v48 = vld [vmem:[%s2248_s2 + $0x310] sm:$0xff] }
 0x6b3   :  { %v1602_v49 = vpop.eup %1601 }
 0x6b4   :  { %v853_v50 = vadd.f32 1.0, %v1602_v49  ;;  %v1604_v51 = vpop.eup %1603  ;;  %v912_v49 = vld [vmem:[%s2248_s2 + $0x330] sm:$0xff] }
 0x6b6   :  { %1605 = vrcp.f32 %v853_v50 }
 0x6b7   :  { %1607 = vpow2.f32 %v1286_v17  ;;  %v1641_v17 = vmov 0.0|0.0  }
 0x6b8   :  { %1520 = vmatprep.subr.bf16.mxu0 %v1641_v17 }
 0x6c0   :  { %v1606_v52 = vpop.eup %1605 }
 0x6c1   :  { %v861_v54 = vmul.f32 %v1606_v52, %v1604_v51  ;;  %v1608_v18 = vpop.eup %1607  ;;  %v860_v20 = vmul.f32 %v1606_v52, %v750_v36  ;;  %v1494_v36 = vpack.c.bf16 %v890_v33, %v889_v32  ;;  %v1502_v51 = vpack.c.bf16 %v894_v46, %v893_v45  ;;  %v1287_v33 = vld [vmem:[%s2248_s2 + $0x100] ss:$8 sm:$0x3]  ;;  %v934_v45 = vld [vmem:[%s2248_s2 + $0x1d8] sm:$0xff] }
 0x6c2   :  { %v854_v19 = vadd.f32 1.0, %v1608_v18  ;;  %v1504_v52 = vpack.c.bf16 %v912_v49, %v911_v48  ;;  %v1521_v18 = vpack.c.bf16 %v921_v15, %v920_v14  ;;  %v1536_v32 = vpack.c.bf16 %v931_v31, %v930_v30  ;;  %v935_v46 = vld [vmem:[%s2248_s2 + $0x1f8] sm:$0xff]  ;;  %v919_v49 = vld [vmem:[%s2248_s2 + $0x410] ss:$0 sm:$0xff] }
 0x6c3   :  { %863 = vrot.lane.b32.xlu0 %v861_v54, %s1640_s28  ;;  %1495 = vmatpush3.bf16.msra.mxu1 %v1494_v36  ;;  %v895_v54 = vld [vmem:[%s2248_s2 + $0x110] sm:$0xff]  ;;  %v941_v34 = vrot.slane %v1287_v33, %v1774_v53  ;;  %v945_v35 = vrot.slane %v1287_v33, %v1779_v56  ;;  %v933_v53 = vld [vmem:[%s2248_s2 + $0x1b8] sm:$0xff] }
 0x6c4   :  { %1609 = vrcp.f32 %v854_v19  ;;  %1497 = vmatprep.subr.bf16.mxu1 %v1496_v37  ;;  %v1506_v59 = vpack.c.bf16 %v896_v55, %v895_v54  ;;  %v923_v19 = vld [vmem:[%s2248_s2 + $0x78] sm:$0xff] }
 0x6c7   :  { %1499 = vmatpush3.bf16.msra.mxu1 %v1498_v42 }
 0x6c8   :  { %1501 = vmatprep.subr.bf16.mxu1 %v1500_v44  ;;  %v932_v44 = vld [vmem:[%s2248_s2 + $0x198] sm:$0xff] }
 0x6c9   :  { %v1539_v56 = vpack.c.bf16 %v933_v53, %v932_v44 }
 0x6cb   :  { %1503 = vmatpush3.bf16.msra.mxu1 %v1502_v51 }
 0x6cc   :  { %1505 = vmatprep.subr.bf16.mxu1 %v1504_v52 }
 0x6ce   :  { %v1610_v43 = vpop.eup %1609 }
 0x6cf   :  { %1507 = vmatpush3.bf16.msra.mxu1 %v1506_v59 }
 0x6d0   :  { %1509 = vmatprep.subr.bf16.mxu1 %v1508_v60 }
 0x6d3   :  { %1511 = vmatpush3.bf16.msra.mxu1 %v1510_v63 }
 0x6d4   :  { %1513 = vmatprep.subr.bf16.mxu1 %v1512_v4 }
 0x6d7   :  { %1515 = vmatpush3.bf16.msra.mxu1 %v1514_v9 }
 0x6d8   :  { %1517 = vmatprep.subr.bf16.mxu1 %v1516_v10 }
 0x6db   :  { %1519 = vmatpush3.bf16.msra.mxu1 %v1518_v13 }
 0x735   :  { %v864_v21 = vpop.permute.xlu0 %863 }
 0x736   :  { %v866_v22 = vadd.f32 %v864_v21, %v860_v20  ;;  %v1524_v20 = vpack.c.bf16 %v923_v19, %v922_v16  ;;  %v924_v21 = vld [vmem:[%s2248_s2 + $0x98] sm:$0xff] }
 0x738   :  { %1611 = vtanh.f32 %v866_v22  ;;  %v925_v22 = vld [vmem:[%s2248_s2 + $0xb8] sm:$0xff] }
 0x739   :  { %v1527_v23 = vpack.c.bf16 %v925_v22, %v924_v21 }
 0x742   :  { %v1612_v47 = vpop.eup %1611 }
 0x743   :  { %v868_v50 = vmul.f32 %v1612_v47, %v1610_v43  ;;  %v1542_v47 = vpack.c.bf16 %v935_v46, %v934_v45 }
 0x745   :  { %949 = vrot.lane.b32.xlu1 %v868_v50, %s1640_s28  ;;  %s1643_s28 = smov [#allocation2]  }
 0x746   :  { %s1182_s25 = sshll.u32 %s1643_s28, 4  ;;  %s1183_s25 = int_to_ptr.vmem [resolvable:$true] %s1182_s25 }
 0x747   :  { %s1615_s26 = scalar_lea.vmem %s1183_s25, 32  ;;  %p1620_p1 = scmp.lt.s32.totalorder %s1183_s25, %s1183_s25 }
 0x748   :  { %p1616_p0 = scmp.ne.s32.totalorder %s1183_s25, %s1615_s26  ;;  %p1621_p2 = scmp.lt.s32.totalorder %s1615_s26, %s1615_s26 }
 0x74a   :  { %p1622_p3 = por %p1621_p2, %p1620_p1 }
 0x74c   :  { %p1623_p4 = pnand %p1622_p3, %p1616_p0 }
 0x7b7   :  { %v950_v0 = vpop.permute.xlu1 %949 }
 0x7b8   :  { %1288 = vmatmul.mubr.msk.f32.vlgmr.msra.gmra.mrb[4].mxu0 %vm422_vm1, %v950_v0 }
 0x7b9   :  { %1522 = vmatpush3.bf16.msra.mxu0 %v1521_v18  ;;  %1373 = vmatprep.mubr.msk.f32.mxu0 %vm1642_vm4, %v1639_v7 }
 0x7ba   :  { %1523 = vmatprep.subr.bf16.mxu0 %v1641_v17 }
 0x7bd   :  { %1525 = vmatpush3.bf16.msra.mxu0 %v1524_v20 }
 0x7be   :  { %1526 = vmatprep.subr.bf16.mxu0 %v1641_v17 }
 0x7c1   :  { %1528 = vmatpush3.bf16.msra.mxu0 %v1527_v23 }
 0x7c2   :  { %1529 = vmatprep.subr.bf16.mxu0 %v1641_v17 }
 0x7c5   :  { %1531 = vmatpush3.bf16.msra.mxu0 %v1530_v26 }
 0x7c6   :  { %1532 = vmatprep.subr.bf16.mxu0 %v1641_v17 }
 0x7c9   :  { %1534 = vmatpush3.bf16.msra.mxu0 %v1533_v29 }
 0x7ca   :  { %1535 = vmatprep.subr.bf16.mxu0 %v1641_v17 }
 0x7cd   :  { %1537 = vmatpush3.bf16.msra.mxu0 %v1536_v32 }
 0x7ce   :  { %1538 = vmatprep.subr.bf16.mxu0 %v1641_v17 }
 0x7d1   :  { %1540 = vmatpush3.bf16.msra.mxu0 %v1539_v56 }
 0x7d2   :  { %1541 = vmatprep.subr.bf16.mxu0 %v1641_v17 }
 0x7d5   :  { %1543 = vmatpush3.bf16.msra.mxu0 %v1542_v47 }
 0x88b   :  { %v1019_v36 = vpop.f32.mrb[4].mxu0 }
 0x88c   :  { %v1020_v37 = vadd.f32 %v1019_v36, %v941_v34  ;;  %v1021_v38 = vpop.f32.mrb[5].mxu0 }
 0x88d   :  { %v1022_v39 = vadd.f32 %v1021_v38, %v945_v35 }
 0x88e   :  { %v1026_v40 = vmul.f32 0.01, %v1020_v37  ;;  %vm1024_vm2 = vcmp.ge.f32.partialorder %v1020_v37, 0.0 }
 0x88f   :  { %v1027_v41 = vmul.f32 0.01, %v1022_v39  ;;  %vm1025_vm3 = vcmp.ge.f32.partialorder %v1022_v39, 0.0 }
 0x890   :  { %v1028_v43 = vsel %vm1024_vm2, %v1020_v37, %v1026_v40 }
 0x891   :  { %v1029_v42 = vsel %vm1025_vm3, %v1022_v39, %v1027_v41 }
 0x892   :  { %1094 = vmatprep.mubr.f32.mxu1 %v1029_v42 }
 0x893   :  { %1095 = vmatmul.mubr.f32.vlgmr.msra.gmra.mrb[6].mxu1 %v1028_v43 }
 0x966   :  { %v1321_v48 = vpop.f32.mrb[6].mxu1 }
 0x967   :  { %v1322_v50 = vpop.f32.mrb[7].mxu1 }
 0x968   :  { %v1323_v51 = vadd.f32 %v1322_v50, %v1321_v48 }
 0x96a   :  { %v1097_v52 = vadd.f32 %v1323_v51, %v919_v49 }
 0x96c   :  { %v1101_v54 = vmul.f32 0.01, %v1097_v52  ;;  %vm1100_vm5 = vcmp.ge.f32.partialorder %v1097_v52, 0.0 }
 0x96e   :  { %v1102_v55 = vsel %vm1100_vm5, %v1097_v52, %v1101_v54 }
 0x96f   :  { %1374 = vmatmul.mubr.f32.vlgmr.msra.gmra.mrb[6].mxu0 %v1102_v55 }
 0xa42   :  { %v1169_v58 = vpop.f32.mrb[6].mxu0 }
 0xa43   :  { %v1170_v59 = vadd.f32 %v1169_v58, %v936_v57  ;;  %v1375_v60 = vpop.f32.mrb[7].mxu0 }
 0xa45   :  { %1613 = vtanh.f32 %v1170_v59 }
 0xa4f   :  { %v1614_v7 = vpop.eup %1613 }
 0xa50   :  { %1175 = vst.msk [vmem:[#allocation2] sm:$0x3] %vm1174_vm6, %v1614_v7 }
 0xa51   :  { %1626 = shalt.err (!%p1623_p4)
}
 0xa52   :  { %s1627_s2 = scalar_lea.hbm %s2249_s3, 32 }
 0xa53   :  { %p1628_p5 = scmp.ne.s32.totalorder %s2249_s3, %s1627_s2  ;;  %p1631_p6 = scmp.lt.u32.totalorder %s1627_s2, %s2249_s3 }
 0xa55   :  { %p1633_p7 = pnand %p1631_p6, %p1628_p5 }
 0xa57   :  { %1636 = shalt.err (!%p1633_p7)
}
 0xa58   :  { %1185 = dma.vmem_to_hbm [thread:$0]  %s1183_s25, 32, %s2249_s3, [#allocation3]  }
 0xa59   :  { %1637 = dma.done.wait [#allocation3], 32  }
 0xa5a   :  { %1638 = vsyncadd [#allocation3], 4294967264 }
 0xa5b   :  { %1189 = vsyncpa [#allocation3], 1 }

</bundles_post_ra>
